<compile_context>
chip_gen: v6e
topology: v6e:2x2x1
jax: 0.10.0
libtpu: 0.0.40
codegen_flags: <defaults>
</compile_context>

<pallas_src>
import functools

import jax
import jax.numpy as jnp
from jax.experimental import pallas as pl
from jax.experimental.pallas import tpu as pltpu

SH_C0 = 0.28209479177387814
SH_C1 = 0.4886025119029199
SH_C2 = (1.0925484305920792, -1.0925484305920792, 0.31539156525252005,
         -1.0925484305920792, 0.5462742152960396)


def _round_up(x, m):
    return ((x + m - 1) // m) * m


def _sh_eval_kernel(base_ref, high_ref, pos_ref, cam_ref, out_ref, *,
                    inner_m, unroll):
    """Degree-2 SH color evaluation for one tile of points.

    base_ref: (3, TM)  VMEM  degree-0 coeffs, row = color channel
    high_ref: (24, TM) VMEM  rows ordered 3*k + c (k = coeff 1..8, c = channel)
    pos_ref : (3, TM)  VMEM  row = x / y / z
    cam_ref : (3,)     SMEM  loop-invariant camera position scalars
    out_ref : (3, TM)  VMEM  clamped colors, row = channel (lane-dense)
    """
    cam_x = cam_ref[0]
    cam_y = cam_ref[1]
    cam_z = cam_ref[2]

    n_chunks = out_ref.shape[-1] // inner_m

    def body(j, carry):
        s = pl.multiple_of(j * inner_m, inner_m)
        sl = pl.ds(s, inner_m)

        dx = pos_ref[0:1, sl] - cam_x                      # (1, inner)
        dy = pos_ref[1:2, sl] - cam_y
        dz = pos_ref[2:3, sl] - cam_z
        d2 = dx * dx + dy * dy + dz * dz
        # eps keeps padded lanes (index 0 duplicates) and degenerate points
        # (position == cam_pos) finite; EUP rsqrt, free slot.
        inv = jax.lax.rsqrt(jnp.maximum(d2, 1e-20))
        x = dx * inv
        y = dy * inv
        z = dz * inv

        res = SH_C0 * base_ref[:, sl]                      # (3, inner)
        res = res - (SH_C1 * y) * high_ref[0:3, sl]
        res = res + (SH_C1 * z) * high_ref[3:6, sl]
        res = res - (SH_C1 * x) * high_ref[6:9, sl]

        xx, yy, zz = x * x, y * y, z * z
        xy, yz, xz = x * y, y * z, x * z
        res = res + (SH_C2[0] * xy) * high_ref[9:12, sl]
        res = res + (SH_C2[1] * yz) * high_ref[12:15, sl]
        res = res + (SH_C2[2] * (2.0 * zz - xx - yy)) * high_ref[15:18, sl]
        res = res + (SH_C2[3] * xz) * high_ref[18:21, sl]
        res = res + (SH_C2[4] * (xx - yy)) * high_ref[21:24, sl]

        out_ref[:, sl] = jnp.clip(res + 0.5, 0.0, 1.0)
        return carry

    jax.lax.fori_loop(0, n_chunks, body, 0, unroll=unroll)


@functools.partial(jax.jit, static_argnames=("tile_m",))
def transfer_sh_forward(base_sh, higher_sh, positions, indexes, cam_pos,
                        glo_feature=None, *, tile_m=16384):
    """Pallas implementation of TransferSH.forward.

    base_sh:    (N, 3, 1) f32
    higher_sh:  (N, 3, 8) f32
    positions:  (N, 3)    f32
    indexes:    (M,)      i32
    cam_pos:    (3,)      f32
    glo_feature: unused by the reference forward (kept for API parity).
    returns:    (M, 3)    f32 in [0, 1]
    """
    del glo_feature  # not used by the reference forward

    m = indexes.shape[0]

    # ---- tile sizing -------------------------------------------------------
    tile_m = max(128, _round_up(int(tile_m), 128))
    m128 = _round_up(m, 128)
    if m128 >= 256:
        # keep >= 2 grid steps so both v7x TensorCores get work
        tile_m = min(tile_m, _round_up(-(-m128 // 2), 128))
    else:
        tile_m = 128
    m_pad = _round_up(m, tile_m)

    # ---- glue: pad the (tiny) index vector, then gather once ---------------
    # TODO(synk): jnp.take clamps out-of-range indexes silently; PyTorch would
    # raise.  Indexes are assumed valid here (as in the reference usage).
    idx = indexes.astype(jnp.int32)
    if m_pad != m:
        idx = jnp.pad(idx, (0, m_pad - m))          # padded lanes gather point 0

    base_g = jnp.take(base_sh.astype(jnp.float32), idx, axis=0)    # (Mp, 3, 1)
    high_g = jnp.take(higher_sh.astype(jnp.float32), idx, axis=0)  # (Mp, 3, 8)
    pos_g = jnp.take(positions.astype(jnp.float32), idx, axis=0)   # (Mp, 3)
    cam = cam_pos.reshape(3).astype(jnp.float32)

    # ---- feature-major, sublane-dense kernel operands ----------------------
    base_k = base_g.reshape(m_pad, 3).T                             # (3, Mp)
    # rows ordered 3*k + c so the kernel uses contiguous static 3-row slices
    high_k = jnp.transpose(high_g, (2, 1, 0)).reshape(24, m_pad)    # (24, Mp)
    pos_k = pos_g.T                                                 # (3, Mp)

    inner_m = next(c for c in (512, 256, 128) if tile_m % c == 0)
    n_chunks = tile_m // inner_m
    unroll = next(u for u in (4, 2, 1) if n_chunks % u == 0)

    grid = (m_pad // tile_m,)
    out = pl.pallas_call(
        functools.partial(_sh_eval_kernel, inner_m=inner_m, unroll=unroll),
        out_shape=jax.ShapeDtypeStruct((3, m_pad), jnp.float32),
        grid_spec=pltpu.PrefetchScalarGridSpec(
            num_scalar_prefetch=0,
            grid=grid,
            in_specs=[
                pl.BlockSpec((3, tile_m), lambda i: (0, i)),
                pl.BlockSpec((24, tile_m), lambda i: (0, i)),
                pl.BlockSpec((3, tile_m), lambda i: (0, i)),
                pl.BlockSpec(memory_space=pltpu.MemorySpace.SMEM),
            ],
            out_specs=pl.BlockSpec((3, tile_m), lambda i: (0, i)),
        ),
        compiler_params=pltpu.CompilerParams(
            dimension_semantics=("parallel",),
            vmem_limit_bytes=32 * 1024 * 1024,
        ),
        cost_estimate=pl.CostEstimate(
            flops=60 * m_pad,
            transcendentals=m_pad,
            bytes_accessed=132 * m_pad),
    )(base_k, high_k, pos_k, cam)

    return out[:, :m].T                                             # (M, 3)


def _reference_forward(base_sh, higher_sh, positions, indexes, cam_pos):
    """Pure-JAX reference for sanity checking."""
    sh = jnp.concatenate([base_sh, higher_sh], axis=2)              # (N, 3, 9)
    sh = jnp.take(sh, indexes, axis=0)                              # (M, 3, 9)
    d = jnp.take(positions, indexes, axis=0) - cam_pos[None, :]     # (M, 3)
    d = d * jax.lax.rsqrt(jnp.sum(d * d, axis=-1, keepdims=True))
    x, y, z = d[:, 0:1], d[:, 1:2], d[:, 2:3]
    res = SH_C0 * sh[:, :, 0]
    res = (res - SH_C1 * y * sh[:, :, 1] + SH_C1 * z * sh[:, :, 2]
           - SH_C1 * x * sh[:, :, 3])
    xx, yy, zz = x * x, y * y, z * z
    xy, yz, xz = x * y, y * z, x * z
    res = (res + SH_C2[0] * xy * sh[:, :, 4] + SH_C2[1] * yz * sh[:, :, 5]
           + SH_C2[2] * (2.0 * zz - xx - yy) * sh[:, :, 6]
           + SH_C2[3] * xz * sh[:, :, 7] + SH_C2[4] * (xx - yy) * sh[:, :, 8])
    return jnp.clip(res + 0.5, 0.0, 1.0)


if __name__ == "__main__":
    # TODO(synk): evaluate_sh_at comes from an external library
    # (taichi_splatting); the standard degree-2 real-SH evaluation with the
    # +0.5 offset and clamp is implemented here (gaussian-splatting convention).
    key = jax.random.PRNGKey(0)
    k1, k2, k3, k4, k5 = jax.random.split(key, 5)

    num_points = 512
    sh_degree = 2
    n_coeff = (sh_degree + 1) ** 2                       # 9
    m_query = 300                                        # exercises padding + 2-step grid

    # module init: randn base, zeros higher.  Small random higher_sh is used so
    # the degree-1/2 basis is exercised by the correctness check.
    base_sh = jax.random.normal(k1, (num_points, 3, 1), dtype=jnp.float32)
    higher_sh = 0.1 * jax.random.normal(
        k5, (num_points, 3, n_coeff - 1), dtype=jnp.float32)

    # forward inputs
    positions = jax.random.normal(k2, (num_points, 3), dtype=jnp.float32) * 2.0
    indexes = jax.random.randint(k3, (m_query,), 0, num_points, dtype=jnp.int32)
    cam_pos = jnp.array([0.5, -0.25, 3.0], dtype=jnp.float32)
    glo_feature = jax.random.normal(k4, (m_query, 16), dtype=jnp.float32)  # unused

    colors = transfer_sh_forward(base_sh, higher_sh, positions, indexes,
                                 cam_pos, glo_feature)
    colors = jax.block_until_ready(colors)

    ref = _reference_forward(base_sh, higher_sh, positions, indexes, cam_pos)
    assert colors.shape == (m_query, 3), colors.shape
    max_err = float(jnp.max(jnp.abs(colors - ref)))
    assert jnp.allclose(colors, ref, atol=1e-4, rtol=1e-4), max_err
    assert bool(jnp.all(jnp.isfinite(colors))), "non-finite output"

    print("KERNEL_OK")
</pallas_src>

<mosaic_0001>
module attributes {stable_mosaic.version = 11 : i64} {
  func.func @_sh_eval_kernel(%arg0: i32, %arg1: memref<3x256xf32, #tpu.memory_space<vmem>>, %arg2: memref<24x256xf32, #tpu.memory_space<vmem>>, %arg3: memref<3x256xf32, #tpu.memory_space<vmem>>, %arg4: memref<3xf32, #tpu.memory_space<smem>>, %arg5: memref<3x256xf32, #tpu.memory_space<vmem>>) attributes {dimension_semantics = [#tpu.dimension_semantics<parallel>], iteration_bounds = array<i64: 2>, scalar_prefetch = 0 : i64, scratch_operands = 0 : i64, tpu.core_type = #tpu.core_type<tc>, window_params = [{transform_indices = @transform_0, window_bounds = array<i64: 3, 256>}, {transform_indices = @transform_1, window_bounds = array<i64: 24, 256>}, {transform_indices = @transform_2, window_bounds = array<i64: 3, 256>}, {transform_indices = @transform_3, window_bounds = array<i64: 3>}, {transform_indices = @transform_4, window_bounds = array<i64: 3, 256>}]} {
    %c0 = arith.constant 0 : index
    %0 = memref.load %arg4[%c0] : memref<3xf32, #tpu.memory_space<smem>>
    %c1 = arith.constant 1 : index
    %1 = memref.load %arg4[%c1] : memref<3xf32, #tpu.memory_space<smem>>
    %c2 = arith.constant 2 : index
    %2 = memref.load %arg4[%c2] : memref<3xf32, #tpu.memory_space<smem>>
    %c0_i32 = arith.constant 0 : i32
    %c256_i32 = arith.constant 256 : i32
    %3 = arith.muli %c0_i32, %c256_i32 : i32
    %4 = tpu.assume_multiple %3, 256 : i32
    %c0_0 = arith.constant 0 : index
    %5 = arith.index_cast %4 : i32 to index
    %6 = vector.load %arg3[%c0_0, %5] : memref<3x256xf32, #tpu.memory_space<vmem>>, vector<1x256xf32>
    %7 = vector.broadcast %0 : f32 to vector<1x256xf32>
    %8 = arith.subf %6, %7 : vector<1x256xf32>
    %c1_1 = arith.constant 1 : index
    %9 = arith.index_cast %4 : i32 to index
    %10 = vector.load %arg3[%c1_1, %9] : memref<3x256xf32, #tpu.memory_space<vmem>>, vector<1x256xf32>
    %11 = vector.broadcast %1 : f32 to vector<1x256xf32>
    %12 = arith.subf %10, %11 : vector<1x256xf32>
    %c2_2 = arith.constant 2 : index
    %13 = arith.index_cast %4 : i32 to index
    %14 = vector.load %arg3[%c2_2, %13] : memref<3x256xf32, #tpu.memory_space<vmem>>, vector<1x256xf32>
    %15 = vector.broadcast %2 : f32 to vector<1x256xf32>
    %16 = arith.subf %14, %15 : vector<1x256xf32>
    %17 = arith.mulf %8, %8 : vector<1x256xf32>
    %18 = arith.mulf %12, %12 : vector<1x256xf32>
    %19 = arith.addf %17, %18 : vector<1x256xf32>
    %20 = arith.mulf %16, %16 : vector<1x256xf32>
    %21 = arith.addf %19, %20 : vector<1x256xf32>
    %cst = arith.constant 9.99999968E-21 : f32
    %22 = vector.broadcast %cst : f32 to vector<1x256xf32>
    %23 = arith.maximumf %21, %22 : vector<1x256xf32>
    %24 = math.rsqrt %23 : vector<1x256xf32>
    %25 = arith.mulf %8, %24 : vector<1x256xf32>
    %26 = arith.mulf %12, %24 : vector<1x256xf32>
    %27 = arith.mulf %16, %24 : vector<1x256xf32>
    %c0_3 = arith.constant 0 : index
    %28 = arith.index_cast %4 : i32 to index
    %29 = vector.load %arg1[%c0_3, %28] : memref<3x256xf32, #tpu.memory_space<vmem>>, vector<3x256xf32>
    %cst_4 = arith.constant 0.282094806 : f32
    %30 = vector.broadcast %cst_4 : f32 to vector<3x256xf32>
    %31 = arith.mulf %30, %29 : vector<3x256xf32>
    %cst_5 = arith.constant 0.488602519 : f32
    %32 = vector.broadcast %cst_5 : f32 to vector<1x256xf32>
    %33 = arith.mulf %32, %26 : vector<1x256xf32>
    %c0_6 = arith.constant 0 : index
    %34 = arith.index_cast %4 : i32 to index
    %35 = vector.load %arg2[%c0_6, %34] : memref<24x256xf32, #tpu.memory_space<vmem>>, vector<3x256xf32>
    %36 = vector.broadcast %33 : vector<1x256xf32> to vector<3x256xf32>
    %37 = arith.mulf %36, %35 : vector<3x256xf32>
    %38 = arith.subf %31, %37 : vector<3x256xf32>
    %cst_7 = arith.constant 0.488602519 : f32
    %39 = vector.broadcast %cst_7 : f32 to vector<1x256xf32>
    %40 = arith.mulf %39, %27 : vector<1x256xf32>
    %c3 = arith.constant 3 : index
    %41 = arith.index_cast %4 : i32 to index
    %42 = vector.load %arg2[%c3, %41] : memref<24x256xf32, #tpu.memory_space<vmem>>, vector<3x256xf32>
    %43 = vector.broadcast %40 : vector<1x256xf32> to vector<3x256xf32>
    %44 = arith.mulf %43, %42 : vector<3x256xf32>
    %45 = arith.addf %38, %44 : vector<3x256xf32>
    %cst_8 = arith.constant 0.488602519 : f32
    %46 = vector.broadcast %cst_8 : f32 to vector<1x256xf32>
    %47 = arith.mulf %46, %25 : vector<1x256xf32>
    %c6 = arith.constant 6 : index
    %48 = arith.index_cast %4 : i32 to index
    %49 = vector.load %arg2[%c6, %48] : memref<24x256xf32, #tpu.memory_space<vmem>>, vector<3x256xf32>
    %50 = vector.broadcast %47 : vector<1x256xf32> to vector<3x256xf32>
    %51 = arith.mulf %50, %49 : vector<3x256xf32>
    %52 = arith.subf %45, %51 : vector<3x256xf32>
    %53 = arith.mulf %25, %25 : vector<1x256xf32>
    %54 = arith.mulf %26, %26 : vector<1x256xf32>
    %55 = arith.mulf %27, %27 : vector<1x256xf32>
    %56 = arith.mulf %25, %26 : vector<1x256xf32>
    %57 = arith.mulf %26, %27 : vector<1x256xf32>
    %58 = arith.mulf %25, %27 : vector<1x256xf32>
    %cst_9 = arith.constant 1.09254849 : f32
    %59 = vector.broadcast %cst_9 : f32 to vector<1x256xf32>
    %60 = arith.mulf %59, %56 : vector<1x256xf32>
    %c9 = arith.constant 9 : index
    %61 = arith.index_cast %4 : i32 to index
    %62 = vector.load %arg2[%c9, %61] : memref<24x256xf32, #tpu.memory_space<vmem>>, vector<3x256xf32>
    %63 = vector.broadcast %60 : vector<1x256xf32> to vector<3x256xf32>
    %64 = arith.mulf %63, %62 : vector<3x256xf32>
    %65 = arith.addf %52, %64 : vector<3x256xf32>
    %cst_10 = arith.constant -1.09254849 : f32
    %66 = vector.broadcast %cst_10 : f32 to vector<1x256xf32>
    %67 = arith.mulf %66, %57 : vector<1x256xf32>
    %c12 = arith.constant 12 : index
    %68 = arith.index_cast %4 : i32 to index
    %69 = vector.load %arg2[%c12, %68] : memref<24x256xf32, #tpu.memory_space<vmem>>, vector<3x256xf32>
    %70 = vector.broadcast %67 : vector<1x256xf32> to vector<3x256xf32>
    %71 = arith.mulf %70, %69 : vector<3x256xf32>
    %72 = arith.addf %65, %71 : vector<3x256xf32>
    %cst_11 = arith.constant 2.000000e+00 : f32
    %73 = vector.broadcast %cst_11 : f32 to vector<1x256xf32>
    %74 = arith.mulf %73, %55 : vector<1x256xf32>
    %75 = arith.subf %74, %53 : vector<1x256xf32>
    %76 = arith.subf %75, %54 : vector<1x256xf32>
    %cst_12 = arith.constant 0.31539157 : f32
    %77 = vector.broadcast %cst_12 : f32 to vector<1x256xf32>
    %78 = arith.mulf %77, %76 : vector<1x256xf32>
    %c15 = arith.constant 15 : index
    %79 = arith.index_cast %4 : i32 to index
    %80 = vector.load %arg2[%c15, %79] : memref<24x256xf32, #tpu.memory_space<vmem>>, vector<3x256xf32>
    %81 = vector.broadcast %78 : vector<1x256xf32> to vector<3x256xf32>
    %82 = arith.mulf %81, %80 : vector<3x256xf32>
    %83 = arith.addf %72, %82 : vector<3x256xf32>
    %cst_13 = arith.constant -1.09254849 : f32
    %84 = vector.broadcast %cst_13 : f32 to vector<1x256xf32>
    %85 = arith.mulf %84, %58 : vector<1x256xf32>
    %c18 = arith.constant 18 : index
    %86 = arith.index_cast %4 : i32 to index
    %87 = vector.load %arg2[%c18, %86] : memref<24x256xf32, #tpu.memory_space<vmem>>, vector<3x256xf32>
    %88 = vector.broadcast %85 : vector<1x256xf32> to vector<3x256xf32>
    %89 = arith.mulf %88, %87 : vector<3x256xf32>
    %90 = arith.addf %83, %89 : vector<3x256xf32>
    %91 = arith.subf %53, %54 : vector<1x256xf32>
    %cst_14 = arith.constant 0.546274245 : f32
    %92 = vector.broadcast %cst_14 : f32 to vector<1x256xf32>
    %93 = arith.mulf %92, %91 : vector<1x256xf32>
    %c21 = arith.constant 21 : index
    %94 = arith.index_cast %4 : i32 to index
    %95 = vector.load %arg2[%c21, %94] : memref<24x256xf32, #tpu.memory_space<vmem>>, vector<3x256xf32>
    %96 = vector.broadcast %93 : vector<1x256xf32> to vector<3x256xf32>
    %97 = arith.mulf %96, %95 : vector<3x256xf32>
    %98 = arith.addf %90, %97 : vector<3x256xf32>
    %cst_15 = arith.constant 5.000000e-01 : f32
    %99 = vector.broadcast %cst_15 : f32 to vector<3x256xf32>
    %100 = arith.addf %98, %99 : vector<3x256xf32>
    %cst_16 = arith.constant 0.000000e+00 : f32
    %cst_17 = arith.constant 1.000000e+00 : f32
    %101 = vector.broadcast %cst_16 : f32 to vector<3x256xf32>
    %102 = arith.maximumf %101, %100 : vector<3x256xf32>
    %103 = vector.broadcast %cst_17 : f32 to vector<3x256xf32>
    %104 = arith.minimumf %103, %102 : vector<3x256xf32>
    %c0_18 = arith.constant 0 : index
    %105 = arith.index_cast %4 : i32 to index
    %106 = vector.load %arg5[%c0_18, %105] : memref<3x256xf32, #tpu.memory_space<vmem>>, vector<3x256xf32>
    tpu.vector_store %arg5[%c0_18, %105], %104 {strides = array<i32>} : memref<3x256xf32, #tpu.memory_space<vmem>>, vector<3x256xf32>,
    %c1_i32 = arith.constant 1 : i32
    return
  }
  func.func @transform_0(%arg0: i32) -> (i32, i32) {
    %c0_i32 = arith.constant 0 : i32
    %c0_i32_0 = arith.constant 0 : i32
    return %c0_i32, %arg0 : i32, i32
  }
  func.func @transform_1(%arg0: i32) -> (i32, i32) {
    %c0_i32 = arith.constant 0 : i32
    %c0_i32_0 = arith.constant 0 : i32
    return %c0_i32, %arg0 : i32, i32
  }
  func.func @transform_2(%arg0: i32) -> (i32, i32) {
    %c0_i32 = arith.constant 0 : i32
    %c0_i32_0 = arith.constant 0 : i32
    return %c0_i32, %arg0 : i32, i32
  }
  func.func @transform_3(%arg0: i32) -> i32 {
    %c0_i32 = arith.constant 0 : i32
    %c0_i32_0 = arith.constant 0 : i32
    return %c0_i32 : i32
  }
  func.func @transform_4(%arg0: i32) -> (i32, i32) {
    %c0_i32 = arith.constant 0 : i32
    %c0_i32_0 = arith.constant 0 : i32
    return %c0_i32, %arg0 : i32, i32
  }
}

</mosaic_0001>

<bundles_post_ra>
// kernel: transfer_sh_forward.1
= control target key start
LH: loop header
LB: loop body
LE: loop exit
PB: predicated region body
PF: predicated region fallthrough
CT: control target
= control target key end

     0   :  { %9 = vsyncpa [#allocation4], 0  ;;  %s772_s15 = smov 0   ;;  %s774_s16 = smov 0   ;;  %s930_s0 = inlined_call_operand.vmem [shape: f32[3,512], index: 0, kind: input, shape index: {}]   ;;  %s931_s1 = inlined_call_operand.vmem [shape: f32[24,512], index: 1, kind: input, shape index: {}]   ;;  %s932_s2 = inlined_call_operand.vmem [shape: f32[3,512], index: 2, kind: input, shape index: {}]   ;;  %s933_s3 = inlined_call_operand.vmem [shape: f32[3], index: 3, kind: input, shape index: {}]   ;;  %s934_s4 = inlined_call_operand.vmem [shape: f32[3,512], index: 4, kind: output, shape index: {}]  }
   0x1   :  { %s776_s17 = smov 0  }
   0x2 LB: > { %s636_s18 = sadd.s32 4294967295, %s744_s17   ;;  %s789_s19 = sadd.s32 1, %s744_s17   ;;  %s744_s17 = sphi %s776_s17, %s944_s17   ;;  %s740_s16 = sphi %s774_s16, %s943_s16   ;;  %s736_s15 = sphi %s772_s15, %s942_s15  }
   0x3   : > { %s45_s20 = ssub.s32 %s744_s17, %s789_s19  ;;  %s48_s21 = sadd.s32 1, %s740_s16 }
   0x4   : > { %p46_p0 = scmp.eq.s32.totalorder %s45_s20, 0  ;;  %p55_p1 = scmp.ne.s32.totalorder %s740_s16, %s736_s15 }
   0x5   : > { %p56_p2 = scmp.eq.s32.totalorder %s744_s17, 0  ;;  %p638_p3 = scmp.ge.s32.totalorder %s744_s17, 1 }
   0x6   : > { %s799_s22 = scalar_select %p46_p0, %s740_s16, %s48_s21  }
   0x7   : > { %p801_p4 = por %p56_p2, %p55_p1  ;;  %p145_p5 = scmp.lt.s32.totalorder %s744_s17, 3 }
   0x8   : > { %p808_p6 = scmp.eq.s32.totalorder %s636_s18, 0  ;;  %s158_s28 = sshll.u32 %s933_s3, 4  ;;  %s159_s28 = int_to_ptr.vmem [resolvable:$true] %s158_s28 }
   0x9   : > { %p812_p7 = pnand %p638_p3, %p145_p5  ;;  %s703_s29 = scalar_lea.vmem %s159_s28, 16 }
   0xa   : > { %p704_p10 = scmp.ne.s32.totalorder %s159_s28, %s703_s29  ;;  %p711_p0 = scmp.lt.s32.totalorder %s159_s28, %s159_s28 }
   0xb   : > { %p670_p8 = pneg %p812_p7  ;;  %p712_p1 = scmp.lt.s32.totalorder %s703_s29, %s703_s29 }
   0xd   : > { %p671_p9 = pnand %p808_p6, %p670_p8  ;;  %p713_p2 = por %p712_p1, %p711_p0 }
   0xf   : > { %p705_p11 = pneg %p671_p9 }
  0x11   : > { %p706_p12 = pnand %p705_p11, %p704_p10 }
  0x13   : > { %p707_p13 = pneg %p706_p12 }
  0x15   : > { %p714_p3 = pnand %p713_p2, %p707_p13 }
  0x17   : > { %717 = shalt.err (!%p714_p3)
}
  0x18   : > { %s746_s30 = smov [#allocation3]   ;;  %p640_p5 = scmp.ge.s32.totalorder %s744_s17, 2 }
  0x19   : > { %673 = dma.vmem_to_smem (!%p671_p9), %s159_s28, 16, %s746_s30, [#allocation4]  }
  0x1a   : > { %165 = sbr.rel (%p640_p5) target bundleno = 38 (0x26), region = 20 }
  0x1f   : > { %177 = sbr.rel (!%p801_p4) target bundleno = 38 (0x26), region = 28  ;;  %s179_s5 = sand.u32 (%p801_p4), 1, %s740_s16  }
  0x20   : > { %s663_s6 = sshll.u32 (%p801_p4), %s744_s17, 4  ;;  %s664_s7 = smul.u32 (%p801_p4), 48, %s179_s5 }
  0x21   : > { %s184_s10 = scalar_lea.vmem (%p801_p4), %s931_s1, %s663_s6 }
  0x22   : > { %v197_v0 = vld [vmem:[%s184_s10] sm:$0xff] (%p801_p4)  ;;  %v199_v1 = vld [vmem:[%s184_s10 + $0x8] sm:$0xff] (%p801_p4)  ;;  %s181_s11 = scalar_lea.vmem (%p801_p4), [#allocation2], %s664_s7 }
  0x23   : > { %v201_v2 = vld [vmem:[%s184_s10 + $0x20] sm:$0xff] (%p801_p4)  ;;  %v203_v3 = vld [vmem:[%s184_s10 + $0x28] sm:$0xff] (%p801_p4)  ;;  %198 = vst [vmem:[%s181_s11] sm:$0xff] (%p801_p4), %v197_v0  ;;  %200 = vst [vmem:[%s181_s11 + $0x8] sm:$0xff] (%p801_p4), %v199_v1 }
  0x24   : > { %v205_v4 = vld [vmem:[%s184_s10 + $0x40] sm:$0xff]  ;;  %v207_v5 = vld [vmem:[%s184_s10 + $0x48] sm:$0xff]  ;;  %202 = vst [vmem:[%s181_s11 + $0x10] sm:$0xff] %v201_v2  ;;  %204 = vst [vmem:[%s181_s11 + $0x18] sm:$0xff] %v203_v3 }
  0x25   : > { %206 = vst [vmem:[%s181_s11 + $0x20] sm:$0xff] %v205_v4  ;;  %208 = vst [vmem:[%s181_s11 + $0x28] sm:$0xff] %v207_v5 }
  0x26 PF: > { %226 = sbr.rel (%p812_p7) target bundleno = 120 (0x78), region = 55  ;;  %s229_s12 = sand.u32 (!%p812_p7), 1, %s736_s15  }
  0x27   : > { %s665_s13 = smul.u32 (!%p812_p7), 48, %s229_s12 }
  0x29   : > { %s834_s14 = scalar_lea.vmem (!%p812_p7), [#allocation2], %s665_s13 }
  0x2b   : > { %731 = dma.done.wait (%p808_p6), [#allocation4], 16  }
  0x2c   : > { %733 = vsyncadd (%p808_p6), [#allocation4], 4294967280 }
  0x2d   : > { %239 = sfence }
  0x2e   : > { %s645_s20 = sshll.u32 %s636_s18, 1  ;;  %s288_s21 = sld [smem:[#allocation3]]  ;;  %v318_v21 = vlaneseq  ;;  %vm355_vm0 = vcmask 1040384   ;;  %v315_v31 = vld [vmem:[%s834_s14] sm:$0x7]  ;;  %vm356_vm1 = vcmask 1044484  }
  0x2f   : > { %p270_p4 = scmp.lt.s32.totalorder %s645_s20, 3  ;;  %s651_s23 = sld [smem:[#allocation3 + $0x1]]  ;;  %v316_v32 = vld [vmem:[%s834_s14 + $0x8] sm:$0x7]  ;;  %vm390_vm2 = vcmask 1041408   ;;  %vm391_vm3 = vcmask 1045508   ;;  %vm877_vm4 = vmor %vm355_vm0, %vm356_vm1 }
  0x30   : > { %s652_s25 = sld [smem:[#allocation3 + $0x2]]  ;;  %v319_v22 = vshrl.u32 %v318_v21, 7  ;;  %v336_v36 = vld [vmem:[%s834_s14] sm:$0x38]  ;;  %v337_v37 = vld [vmem:[%s834_s14 + $0x8] sm:$0x38]  ;;  %vm884_vm5 = vmor %vm390_vm2, %vm391_vm3 }
  0x31   : > { %s946_s20 = smov (!%p270_p4, %s645_s20), 3  ;;  %v365_v38 = vld [vmem:[%s834_s14] sm:$0xc0]  ;;  %v366_v47 = vld [vmem:[%s834_s14 + $0x8] sm:$0xc0] }
  0x32   : > { %s842_s26 = sshll.u32 %s946_s20, 2  ;;  %v852_v25 = vsub.s32 0, %v319_v22  ;;  %v854_v29 = vsub.s32 1, %v319_v22  ;;  %v367_v48 = vld [vmem:[%s834_s14 + $0x10] sm:$0x1] }
  0x33   : > { %s280_s28 = scalar_lea.vmem %s932_s2, %s842_s26  ;;  %s273_s24 = scalar_lea.vmem %s930_s0, %s842_s26  ;;  %v368_v49 = vld [vmem:[%s834_s14 + $0x18] sm:$0x1]  ;;  %v406_v62 = vld [vmem:[%s834_s14 + $0x10] sm:$0xe]  ;;  %v407_v2 = vld [vmem:[%s834_s14 + $0x18] sm:$0xe] }
  0x34   : > { %v292_v6 = vstv %s288_s21  ;;  %v291_v7 = vld [vmem:[%s280_s28] ss:$4 sm:$0x3]  ;;  %v653_v8 = vld [vmem:[%s280_s28 + $0x1] ss:$4 sm:$0x3]  ;;  %s286_s5 = scalar_lea.vmem %s934_s4, %s842_s26 }
  0x35   : > { %v296_v9 = vstv %s651_s23  ;;  %v293_v10 = vsub.f32 %v291_v7, %v292_v6  ;;  %v654_v12 = vld [vmem:[%s280_s28 + $0x2] ss:$4 sm:$0x3] }
  0x36   : > { %v297_v11 = vsub.f32 %v653_v8, %v296_v9  ;;  %v300_v13 = vstv %s652_s25  ;;  %v312_v23 = vld [vmem:[%s273_s24] sm:$0x77] }
  0x37   : > { %v301_v14 = vsub.f32 %v654_v12, %v300_v13  ;;  %v302_v15 = vmul.f32 %v293_v10, %v293_v10  ;;  %v313_v30 = vmul.f32 0.2820948, %v312_v23 }
  0x38   : > { %v303_v16 = vmul.f32 %v297_v11, %v297_v11 }
  0x39   : > { %v305_v17 = vmul.f32 %v301_v14, %v301_v14 }
  0x3a   : > { %v304_v18 = vadd.f32 %v303_v16, %v302_v15 }
  0x3c   : > { %v306_v19 = vadd.f32 %v305_v17, %v304_v18 }
  0x3e   : > { %v307_v20 = vmax.f32 %v306_v19, 1e-20 }
  0x40   : > { %701 = vrsqrt.f32 %v307_v20 }
  0x4d   : > { %v702_v24 = vpop.eup %701 }
  0x4e   : > { %v309_v26 = vmul.f32 %v702_v24, %v293_v10  ;;  %v310_v27 = vmul.f32 %v702_v24, %v297_v11  ;;  %v311_v28 = vmul.f32 %v702_v24, %v301_v14  ;;  %v429_v24 = vld [vmem:[%s834_s14 + $0x10] sm:$0x70] }
  0x50   : > { %v314_v33 = vmul.f32 0.48860252, %v310_v27  ;;  %v335_v34 = vmul.f32 0.48860252, %v311_v28  ;;  %v364_v35 = vmul.f32 0.48860252, %v309_v26  ;;  %v861_v39 = vmul.f32 %v309_v26, %v309_v26 }
  0x51   : > { %v401_v40 = vmul.f32 %v311_v28, %v311_v28  ;;  %v402_v41 = vmul.f32 %v310_v27, %v309_v26  ;;  %v403_v42 = vmul.f32 %v311_v28, %v310_v27  ;;  %v404_v52 = vmul.f32 %v311_v28, %v309_v26  ;;  %v485_v28 = vld [vmem:[%s834_s14 + $0x20] sm:$0x1c] }
  0x52   : > { %v321_v43 = vrot.slane %v314_v33, %v852_v25  ;;  %v325_v44 = vrot.slane %v314_v33, %v854_v29  ;;  %v342_v45 = vrot.slane %v335_v34, %v852_v25  ;;  %v346_v46 = vrot.slane %v335_v34, %v854_v29 }
  0x53   : > { %v373_v50 = vrot.slane %v364_v35, %v852_v25  ;;  %v377_v51 = vrot.slane %v364_v35, %v854_v29  ;;  %v405_v53 = vmul.f32 1.0925485, %v402_v41  ;;  %v428_v8 = vmul.f32 -1.0925485, %v403_v42 }
  0x54   : > { %v328_v54 = vmul.f32 %v321_v43, %v315_v31  ;;  %v329_v55 = vmul.f32 %v325_v44, %v316_v32  ;;  %v349_v56 = vmul.f32 %v342_v45, %v336_v36  ;;  %v350_v57 = vmul.f32 %v346_v46, %v337_v37  ;;  %v453_v44 = vld [vmem:[%s834_s14 + $0x10] sm:$0x80] }
  0x55   : > { %v380_v58 = vmul.f32 %v373_v50, %v365_v38  ;;  %v381_v59 = vmul.f32 %v377_v51, %v366_v47  ;;  %v382_v60 = vmul.f32 %v373_v50, %v367_v48  ;;  %v383_v61 = vmul.f32 %v377_v51, %v368_v49  ;;  %v512_v47 = vld [vmem:[%s834_s14 + $0x20] sm:$0xe0]  ;;  %v513_v48 = vld [vmem:[%s834_s14 + $0x28] sm:$0xe0]  ;;  %v454_v49 = vld [vmem:[%s834_s14 + $0x18] sm:$0x80] }
  0x56   : > { %v332_v63 = vcombine.low %v328_v54, %v329_v55  ;;  %v353_v0 = vcombine.low %v349_v56, %v350_v57  ;;  %v354_v1 = vcombine.high %v349_v56, %v350_v57  ;;  %v412_v3 = vrot.slane %v405_v53, %v852_v25  ;;  %v455_v50 = vld [vmem:[%s834_s14 + $0x20] sm:$0x3]  ;;  %v456_v51 = vld [vmem:[%s834_s14 + $0x28] sm:$0x3] }
  0x57   : > { %v388_v5 = vcombine.high %v380_v58, %v381_v59  ;;  %v389_v6 = vcombine.low %v382_v60, %v383_v61  ;;  %v416_v7 = vrot.slane %v405_v53, %v854_v29  ;;  %v400_v16 = vmul.f32 %v310_v27, %v310_v27  ;;  %v430_v27 = vld [vmem:[%s834_s14 + $0x18] sm:$0x70] }
  0x58   : > { %v334_v9 = vsub.f32 %v313_v30, %v332_v63  ;;  %v655_v10 = vrot.slane %v353_v0, 11  ;;  %v360_v11 = vrot.slane %v354_v1, 7  ;;  %v419_v12 = vmul.f32 %v412_v3, %v406_v62  ;;  %v486_v30 = vld [vmem:[%s834_s14 + $0x28] sm:$0x1c] }
  0x59   : > { %v656_v14 = vrot.slane %v388_v5, 10  ;;  %v395_v15 = vrot.slane %v389_v6, 6  ;;  %v420_v17 = vmul.f32 %v416_v7, %v407_v2  ;;  %v435_v19 = vrot.slane %v428_v8, %v852_v25 }
  0x5a   : > { %v361_v18 = vsel %vm877_vm4, %v655_v10, %v360_v11  ;;  %v449_v20 = vmul.f32 2.0, %v401_v40  ;;  %v484_v21 = vmul.f32 -1.0925485, %v404_v52  ;;  %v439_v26 = vrot.slane %v428_v8, %v854_v29 }
  0x5b   : > { %v363_v22 = vadd.f32 %v361_v18, %v334_v9  ;;  %v423_v23 = vcombine.low %v419_v12, %v420_v17  ;;  %v396_v31 = vsel %vm884_vm5, %v656_v14, %v395_v15  ;;  %v510_v35 = vsub.f32 %v861_v39, %v400_v16 }
  0x5c   : > { %v450_v32 = vsub.f32 %v449_v20, %v861_v39  ;;  %v491_v33 = vrot.slane %v484_v21, %v852_v25  ;;  %v495_v34 = vrot.slane %v484_v21, %v854_v29  ;;  %v442_v36 = vmul.f32 %v435_v19, %v429_v24 }
  0x5d   : > { %v398_v41 = vsub.f32 %v363_v22, %v396_v31  ;;  %v657_v42 = vrot.slane %v423_v23, 9  ;;  %v443_v43 = vmul.f32 %v439_v26, %v430_v27  ;;  %v511_v45 = vmul.f32 0.54627424, %v510_v35 }
  0x5e   : > { %v451_v37 = vsub.f32 %v450_v32, %v400_v16  ;;  %v498_v38 = vmul.f32 %v491_v33, %v485_v28  ;;  %v499_v40 = vmul.f32 %v495_v34, %v486_v30 }
  0x5f   : > { %v518_v52 = vrot.slane %v511_v45, %v852_v25  ;;  %v522_v53 = vrot.slane %v511_v45, %v854_v29  ;;  %v427_v57 = vadd.f32 %v657_v42, %v398_v41  ;;  %v446_v58 = vcombine.high %v442_v36, %v443_v43 }
  0x60   : > { %v452_v46 = vmul.f32 0.31539157, %v451_v37  ;;  %v502_v55 = vcombine.low %v498_v38, %v499_v40  ;;  %v503_v56 = vcombine.high %v498_v38, %v499_v40 }
  0x61   : > { %v525_v59 = vmul.f32 %v518_v52, %v512_v47  ;;  %v526_v60 = vmul.f32 %v522_v53, %v513_v48  ;;  %v448_v6 = vadd.f32 %v446_v58, %v427_v57 }
  0x62   : > { %v461_v39 = vrot.slane %v452_v46, %v852_v25  ;;  %v465_v54 = vrot.slane %v452_v46, %v854_v29  ;;  %v659_v3 = vrot.slane %v502_v55, 10  ;;  %v506_v5 = vrot.slane %v503_v56, 6 }
  0x63   : > { %v529_v7 = vcombine.high %v525_v59, %v526_v60 }
  0x64   : > { %v468_v61 = vmul.f32 %v461_v39, %v453_v44  ;;  %v469_v62 = vmul.f32 %v465_v54, %v454_v49  ;;  %v470_v63 = vmul.f32 %v461_v39, %v455_v50  ;;  %v471_v0 = vmul.f32 %v465_v54, %v456_v51 }
  0x65   : > { %v507_v9 = vsel %vm884_vm5, %v659_v3, %v506_v5  ;;  %v660_v11 = vrot.slane %v529_v7, 9 }
  0x66   : > { %v476_v1 = vcombine.high %v468_v61, %v469_v62  ;;  %v477_v2 = vcombine.low %v470_v63, %v471_v0 }
  0x68   : > { %v658_v25 = vrot.slane %v476_v1, 11  ;;  %v480_v8 = vrot.slane %v477_v2, 7 }
  0x6a   : > { %v481_v29 = vsel %vm877_vm4, %v658_v25, %v480_v8 }
  0x6b   : > { %v483_v10 = vadd.f32 %v481_v29, %v448_v6 }
  0x6d   : > { %v509_v12 = vadd.f32 %v507_v9, %v483_v10 }
  0x6f   : > { %v533_v14 = vadd.f32 %v660_v11, %v509_v12 }
  0x71   : > { %v534_v15 = vadd.f32 0.5, %v533_v14 }
  0x73   : > { %v535_v16 = vmax.f32 %v534_v15, 0.0 }
  0x75   : > { %v536_v17 = vmin.f32 %v535_v16, 1.0 }
  0x77   : > { %537 = vst [vmem:[%s286_s5] sm:$0x77] %v536_v17 }
  0x78 PF: > { %p12_p6 = scmp.ge.s32.totalorder %s789_s19, 4   ;;  %s942_s15 = smov %s740_s16 }
  0x79   : > { %s943_s16 = smov %s799_s22  ;;  %s944_s17 = smov %s789_s19 }
  0x7a   :  { %14 = sbr.rel (!%p12_p6) target bundleno = 2 (0x2), region = 107 }
  0x7f   :  { %560 = vsyncpa [#allocation4], 1 }
  0x80   :  { %562 = vsyncpa [#allocation4 + $0x1], 1 }

</bundles_post_ra>
